<compile_context>
chip_gen: v7x
topology: tpu7x:2x2x1
jax: 0.10.0
libtpu: 0.0.40
codegen_flags: <defaults>
</compile_context>

<pallas_src>
import jax
import jax.numpy as jnp
from jax.experimental import pallas as pl
from jax.experimental.pallas import tpu as pltpu


def _pool_proj_kernel(x_ref, w_ref, b_ref, o_ref):
    # x_ref: (TILE_B, C, HW)  input tile for this batch slab
    # w_ref: (C, F_pad)       projection weight with 1/HW folded in (f32)
    # b_ref: (1, F_pad)       projection bias (f32)
    # o_ref: (TILE_B, F_pad)
    xs = jnp.sum(x_ref[...].astype(jnp.float32), axis=-1)          # (TILE_B, C), VPU+XLU
    acc = jnp.dot(xs, w_ref[...], preferred_element_type=jnp.float32)  # MXU, f32 acc
    o_ref[...] = (acc + b_ref[...]).astype(o_ref.dtype)


def _round_up(n, m):
    return -(-n // m) * m


@jax.jit
def spatial_mean_pool(x, weight, bias):
    """
    x:      (B, C, H, W) float32 (or bf16)
    weight: (F, C)  -- torch.nn.Linear.weight convention
    bias:   (F,)
    returns (B, F)
    """
    B, C, H, W = x.shape
    F = weight.shape[0]
    HW = H * W

    # --- weight prep: (F, C) -> (C, F), fold 1/HW into the weight ---
    w2 = weight.T.astype(jnp.float32) * (1.0 / HW)                  # (C, F)

    # --- lane-dense output: pad F up to a multiple of 128 ---
    F_pad = _round_up(max(F, 1), 128)
    if F_pad != F:
        w2 = jnp.pad(w2, ((0, 0), (0, F_pad - F)))
        b2 = jnp.pad(bias.astype(jnp.float32), (0, F_pad - F)).reshape(1, F_pad)
    else:
        b2 = bias.astype(jnp.float32).reshape(1, F_pad)

    # Free reshape (contiguous trailing dims): (B, C, H, W) -> (B, C, HW).
    x3 = x.reshape(B, C, HW)

    # --- batch tiling: biggest tile under a conservative VMEM budget ---
    itemsize = jnp.dtype(x.dtype).itemsize
    c_pad = _round_up(C, 8)          # sublane padding of the VMEM tile
    hw_pad = _round_up(HW, 128)      # lane padding of the VMEM tile
    row_bytes = c_pad * hw_pad * itemsize
    budget = 8 * 1024 * 1024         # per x buffer; ~2x for double buffering
    tile_b = max(8, min(512, budget // max(row_bytes, 1)))
    tile_b = max(8, (tile_b // 8) * 8)
    if B <= tile_b:
        tile_b = max(8, _round_up(B, 8))

    B_pad = _round_up(B, tile_b)
    if B_pad != B:
        # Padded rows only produce (discarded) bias rows; sliced off below.
        x3 = jnp.pad(x3, ((0, B_pad - B), (0, 0), (0, 0)))

    grid = (B_pad // tile_b,)

    cost = pl.CostEstimate(
        flops=B_pad * C * HW + 2 * B_pad * C * F_pad,   # spatial adds + projection
        transcendentals=0,
        bytes_accessed=(B_pad * C * HW * itemsize       # read x (dominant)
                        + C * F_pad * 4 + F_pad * 4     # read weight / bias (once)
                        + B_pad * F_pad * itemsize),    # write output
    )

    out = pl.pallas_call(
        _pool_proj_kernel,
        out_shape=jax.ShapeDtypeStruct((B_pad, F_pad), x.dtype),
        grid=grid,
        in_specs=[
            pl.BlockSpec((tile_b, C, HW), lambda i: (i, 0, 0)),  # pipelined batch tiles
            pl.BlockSpec((C, F_pad), lambda i: (0, 0)),          # weight resident across grid
            pl.BlockSpec((1, F_pad), lambda i: (0, 0)),          # bias resident across grid
        ],
        out_specs=pl.BlockSpec((tile_b, F_pad), lambda i: (i, 0)),
        compiler_params=pltpu.CompilerParams(
            dimension_semantics=("parallel",),                   # megacore split on v7x
            vmem_limit_bytes=32 * 1024 * 1024,
        ),
        cost_estimate=cost,
    )(x3, w2, b2)

    return out[:B, :F]


if __name__ == "__main__":
    # Module config: input_shape = (C, H, W) = (4, 16, 16), feature_dim = 32
    B, C, H, W = 2, 4, 16, 16
    feature_dim = 32

    key = jax.random.PRNGKey(0)
    kx, kw, kb = jax.random.split(key, 3)

    x = jax.random.normal(kx, (B, C, H, W), dtype=jnp.float32)
    # Deterministic synthetic init of nn.Linear(C, feature_dim) parameters.
    bound = 1.0 / (C ** 0.5)
    weight = jax.random.uniform(kw, (feature_dim, C), jnp.float32, -bound, bound)
    bias = jax.random.uniform(kb, (feature_dim,), jnp.float32, -bound, bound)

    out = spatial_mean_pool(x, weight, bias)
    out = jax.block_until_ready(out)

    # Reference check (plain JAX).
    ref = jnp.mean(x.reshape(B, C, H * W), axis=2) @ weight.T + bias
    assert out.shape == (B, feature_dim)
    assert jnp.allclose(out, ref, atol=2e-3, rtol=2e-3), \
        f"max abs err {jnp.max(jnp.abs(out - ref))}"

    print("KERNEL_OK")
</pallas_src>

<mosaic_0001>
module attributes {stable_mosaic.version = 11 : i64} {
  func.func @_pool_proj_kernel(%arg0: i32, %arg1: memref<8x4x256xf32, #tpu.memory_space<vmem>>, %arg2: memref<4x128xf32, #tpu.memory_space<vmem>>, %arg3: memref<1x128xf32, #tpu.memory_space<vmem>>, %arg4: memref<8x128xf32, #tpu.memory_space<vmem>>) attributes {dimension_semantics = [#tpu.dimension_semantics<parallel>], iteration_bounds = array<i64: 1>, scalar_prefetch = 0 : i64, scratch_operands = 0 : i64, tpu.core_type = #tpu.core_type<tc>, window_params = [{transform_indices = @transform_0, window_bounds = array<i64: 8, 4, 256>}, {pipeline_mode = #tpu.pipeline_mode<synchronous>, transform_indices = @transform_1, window_bounds = array<i64: 4, 128>}, {pipeline_mode = #tpu.pipeline_mode<synchronous>, transform_indices = @transform_2, window_bounds = array<i64: 1, 128>}, {transform_indices = @transform_3, window_bounds = array<i64: 8, 128>}]} {
    %c0 = arith.constant 0 : index
    %c0_0 = arith.constant 0 : index
    %c0_1 = arith.constant 0 : index
    %0 = vector.load %arg1[%c0, %c0_0, %c0_1] : memref<8x4x256xf32, #tpu.memory_space<vmem>>, vector<8x4x256xf32>
    %cst = arith.constant dense<0.000000e+00> : vector<8x4xf32>
    %1 = vector.multi_reduction <add>, %0, %cst [2] : vector<8x4x256xf32> to vector<8x4xf32>
    %c0_2 = arith.constant 0 : index
    %c0_3 = arith.constant 0 : index
    %2 = vector.load %arg2[%c0_2, %c0_3] : memref<4x128xf32, #tpu.memory_space<vmem>>, vector<4x128xf32>
    %cst_4 = arith.constant dense<0.000000e+00> : vector<8x128xf32>
    %3 = tpu.matmul %1, %2, %cst_4 {dimension_numbers = #tpu.dot_dimension_numbers<[1], [0], [0], [1], [0, 0, 1, 1], [], []>} : vector<8x4xf32>, vector<4x128xf32>, vector<8x128xf32> -> vector<8x128xf32>
    %c0_5 = arith.constant 0 : index
    %c0_6 = arith.constant 0 : index
    %4 = vector.load %arg3[%c0_5, %c0_6] : memref<1x128xf32, #tpu.memory_space<vmem>>, vector<1x128xf32>
    %5 = vector.broadcast %4 : vector<1x128xf32> to vector<8x128xf32>
    %6 = arith.addf %3, %5 : vector<8x128xf32>
    %c0_7 = arith.constant 0 : index
    %c0_8 = arith.constant 0 : index
    %7 = vector.load %arg4[%c0_7, %c0_8] : memref<8x128xf32, #tpu.memory_space<vmem>>, vector<8x128xf32>
    tpu.vector_store %arg4[%c0_7, %c0_8], %6 {strides = array<i32>} : memref<8x128xf32, #tpu.memory_space<vmem>>, vector<8x128xf32>,
    return
  }
  func.func @transform_0(%arg0: i32) -> (i32, i32, i32) {
    %c0_i32 = arith.constant 0 : i32
    %c0_i32_0 = arith.constant 0 : i32
    %c0_i32_1 = arith.constant 0 : i32
    return %arg0, %c0_i32, %c0_i32_0 : i32, i32, i32
  }
  func.func @transform_1(%arg0: i32) -> (i32, i32) {
    %c0_i32 = arith.constant 0 : i32
    %c0_i32_0 = arith.constant 0 : i32
    %c0_i32_1 = arith.constant 0 : i32
    return %c0_i32, %c0_i32_0 : i32, i32
  }
  func.func @transform_2(%arg0: i32) -> (i32, i32) {
    %c0_i32 = arith.constant 0 : i32
    %c0_i32_0 = arith.constant 0 : i32
    %c0_i32_1 = arith.constant 0 : i32
    return %c0_i32, %c0_i32_0 : i32, i32
  }
  func.func @transform_3(%arg0: i32) -> (i32, i32) {
    %c0_i32 = arith.constant 0 : i32
    %c0_i32_0 = arith.constant 0 : i32
    return %arg0, %c0_i32 : i32, i32
  }
}

</mosaic_0001>

<bundles_post_ra>
// kernel: spatial_mean_pool.1
= control target key start
LH: loop header
LB: loop body
LE: loop exit
PB: predicated region body
PF: predicated region fallthrough
CT: control target
= control target key end

     0   :  { %vm46_vm0 = vcmask 1043456   ;;  %v252_v40 = vmov 0.0   ;;  %vm253_vm1 = vmmov 0   ;;  %v103_v42 = vlaneseq  ;;  %s324_s0 = inlined_call_operand.vmem [shape: f32[8,4,256], index: 0, kind: input, shape index: {}]   ;;  %s325_s1 = inlined_call_operand.vmem [shape: f32[4,128], index: 1, kind: input, shape index: {}]   ;;  %s326_s2 = inlined_call_operand.vmem [shape: f32[1,128], index: 2, kind: input, shape index: {}]   ;;  %s327_s3 = inlined_call_operand.vmem [shape: f32[8,128], index: 3, kind: output, shape index: {}]  }
   0x1   :  { %v14_v0 = vld [vmem:[%s324_s0] sm:$0xff]  ;;  %v16_v1 = vld [vmem:[%s324_s0 + $0x10] sm:$0xff]  ;;  %v15_v2 = vld [vmem:[%s324_s0 + $0x8] sm:$0xff]  ;;  %237 = vmatprep.subr.mxu0 %v252_v40  ;;  %239 = vmatprep.mubr.msk.f32.mxu0 %vm253_vm1, %v252_v40  ;;  %vm137_vm2 = vcmask 1041409   ;;  %vm139_vm3 = vcmask 1042434   ;;  %vm141_vm4 = vcmask 1043459  }
   0x2   :  { %v30_v3 = vcombine.high %v14_v0, %v14_v0  ;;  %v47_v4 = vsel %vm46_vm0, %v14_v0, 0.0  ;;  %v32_v5 = vcombine.high %v16_v1, %v16_v1  ;;  %v57_v6 = vsel %vm46_vm0, %v16_v1, 0.0  ;;  %v17_v7 = vld [vmem:[%s324_s0 + $0x18] sm:$0xff]  ;;  %v18_v8 = vld [vmem:[%s324_s0 + $0x20] sm:$0xff]  ;;  %v19_v12 = vld [vmem:[%s324_s0 + $0x28] sm:$0xff] }
   0x3   :  { %v31_v9 = vcombine.high %v15_v2, %v15_v2  ;;  %v52_v10 = vsel %vm46_vm0, %v15_v2, 0.0  ;;  %v33_v11 = vcombine.high %v17_v7, %v17_v7  ;;  %v62_v15 = vsel %vm46_vm0, %v17_v7, 0.0  ;;  %v20_v21 = vld [vmem:[%s324_s0 + $0x30] sm:$0xff]  ;;  %v21_v22 = vld [vmem:[%s324_s0 + $0x38] sm:$0xff]  ;;  %v87_v41 = vld [vmem:[%s325_s1] sm:$0xf] }
   0x4   :  { %v48_v13 = vsel %vm46_vm0, %v30_v3, 0.0  ;;  %v58_v14 = vsel %vm46_vm0, %v32_v5, 0.0  ;;  %v34_v16 = vcombine.high %v18_v8, %v18_v8  ;;  %v35_v23 = vcombine.high %v19_v12, %v19_v12  ;;  %238 = vmatpush3.msk.msra.mxu0 %vm46_vm0, %v87_v41  ;;  %v232_v5 = vld [vmem:[%s326_s2] ss:$0 sm:$0xff] }
   0x5   :  { %v49_v17 = vadd.f32 %v48_v13, %v47_v4  ;;  %v59_v18 = vadd.f32 %v58_v14, %v57_v6  ;;  %v53_v19 = vsel %vm46_vm0, %v31_v9, 0.0  ;;  %v63_v20 = vsel %vm46_vm0, %v33_v11, 0.0 }
   0x6   :  { %v54_v24 = vadd.f32 %v53_v19, %v52_v10  ;;  %v64_v25 = vadd.f32 %v63_v20, %v62_v15  ;;  %v67_v26 = vsel %vm46_vm0, %v18_v8, 0.0  ;;  %v68_v27 = vsel %vm46_vm0, %v34_v16, 0.0 }
   0x7   :  { %50 = vadd.xlane.f32.xlu0 %v49_v17  ;;  %60 = vadd.xlane.f32.xlu1 %v59_v18  ;;  %v72_v28 = vsel %vm46_vm0, %v19_v12, 0.0  ;;  %v73_v29 = vsel %vm46_vm0, %v35_v23, 0.0  ;;  %v36_v30 = vcombine.high %v20_v21, %v20_v21  ;;  %v37_v31 = vcombine.high %v21_v22, %v21_v22 }
   0x8   :  { %v69_v32 = vadd.f32 %v68_v27, %v67_v26  ;;  %v74_v33 = vadd.f32 %v73_v29, %v72_v28  ;;  %v77_v34 = vsel %vm46_vm0, %v20_v21, 0.0  ;;  %v82_v36 = vsel %vm46_vm0, %v21_v22, 0.0 }
   0x9   :  { %v78_v35 = vsel %vm46_vm0, %v36_v30, 0.0  ;;  %v83_v37 = vsel %vm46_vm0, %v37_v31, 0.0  ;;  %v104_v43 = vand.u32 127, %v103_v42  ;;  %v106_v44 = vshrl.u32 %v103_v42, 7 }
   0xa   :  { %v79_v38 = vadd.f32 %v78_v35, %v77_v34  ;;  %v84_v39 = vadd.f32 %v83_v37, %v82_v36  ;;  %vm143_vm5 = vcmask 1044484   ;;  %vm145_vm6 = vcmask 1045509  }
   0xb   :  { %55 = vadd.xlane.f32.xlu0 %v54_v24  ;;  %65 = vadd.xlane.f32.xlu1 %v64_v25  ;;  %v107_v47 = vsub.s32 %v104_v43, %v106_v44  ;;  %vm147_vm7 = vcmask 1046534   ;;  %vm149_vm8 = vcmask 1047559   ;;  %vm151_vm9 = vcmask 31744  }
   0xf   :  { %70 = vadd.xlane.f32.xlu0 %v69_v32  ;;  %75 = vadd.xlane.f32.xlu1 %v74_v33 }
  0x13   :  { %80 = vadd.xlane.f32.xlu0 %v79_v38  ;;  %85 = vadd.xlane.f32.xlu1 %v84_v39 }
  0x94   :  { %v51_v45 = vpop.xlane.xlu0 %50  ;;  %v61_v46 = vpop.xlane.xlu1 %60 }
  0x95   :  { %v108_v50 = vrot.slane %v51_v45, %v107_v47  ;;  %v116_v53 = vrot.slane %v61_v46, %v107_v47 }
  0x98   :  { %v56_v48 = vpop.xlane.xlu0 %55  ;;  %v66_v49 = vpop.xlane.xlu1 %65 }
  0x99   :  { %v112_v51 = vrot.slane %v56_v48, %v107_v47  ;;  %v120_v52 = vrot.slane %v66_v49, %v107_v47 }
  0x9b   :  { %v138_v54 = vsel %vm137_vm2, %v112_v51, %v108_v50 }
  0x9c   :  { %v140_v55 = vsel %vm139_vm3, %v116_v53, %v138_v54  ;;  %v71_v56 = vpop.xlane.xlu0 %70  ;;  %v76_v57 = vpop.xlane.xlu1 %75 }
  0x9d   :  { %v142_v58 = vsel %vm141_vm4, %v120_v52, %v140_v55  ;;  %v124_v59 = vrot.slane %v71_v56, %v107_v47  ;;  %v128_v60 = vrot.slane %v76_v57, %v107_v47 }
  0x9f   :  { %v144_v61 = vsel %vm143_vm5, %v124_v59, %v142_v58 }
  0xa0   :  { %v81_v62 = vpop.xlane.xlu0 %80  ;;  %v86_v63 = vpop.xlane.xlu1 %85  ;;  %v146_v2 = vsel %vm145_vm6, %v128_v60, %v144_v61 }
  0xa1   :  { %v132_v0 = vrot.slane %v81_v62, %v107_v47  ;;  %v136_v1 = vrot.slane %v86_v63, %v107_v47 }
  0xa3   :  { %v148_v3 = vsel %vm147_vm7, %v132_v0, %v146_v2 }
  0xa4   :  { %v150_v4 = vsel %vm149_vm8, %v136_v1, %v148_v3 }
  0xa5   :  { %240 = vmatmul.mubr.msk.f32.vlgmr.msra.gmra.mrb[0].mxu0 %vm151_vm9, %v150_v4 }
 0x178   :  { %v223_v6 = vpop.f32.mrb[0].mxu0 }
 0x179   :  { %v224_v7 = vadd.f32 %v232_v5, %v223_v6  ;;  %v241_v8 = vpop.f32.mrb[1].mxu0 }
 0x17b   :  { %227 = vst [vmem:[%s327_s3] sm:$0xff] %v224_v7 }

</bundles_post_ra>
